<compile_context>
chip_gen: v5e
topology: v5e:2x2
jax: 0.10.0
libtpu: 0.0.40
codegen_flags: <defaults>
</compile_context>

<pallas_src>
import numpy as np

import jax
import jax.numpy as jnp
from jax.experimental import pallas as pl
from jax.experimental.pallas import tpu as pltpu


def upsample_nearest2x_kernel(x_ref, g_ref, o_ref):
    """x_ref: (TR, P*W) packed rows; g_ref: (P*W, 4*P*W) 0/1 expansion; o_ref: (TR, 4*P*W)."""
    x = x_ref[...]
    y = jnp.dot(x.astype(g_ref.dtype), g_ref[...],
                preferred_element_type=jnp.float32)     # MXU does the replication
    o_ref[...] = y.astype(o_ref.dtype)


def _expansion_matrix(p, w, dtype):
    """Host-built 0/1 matrix G (pw, 4*pw): y = x @ G is the packed-row 2x upsample."""
    pw = p * w
    out_w = 4 * pw
    k = np.arange(out_w)
    src = (k // (2 * w) // 2) * w + (k % (2 * w)) // 2
    g = np.zeros((pw, out_w), dtype=np.float32)
    g[src, k] = 1.0
    return jnp.asarray(g, dtype=dtype)


def _pw_cap(dtype):
    """Lane-pack cap: 128 on v6e/v7x (and narrow dtypes anywhere); 64 for f32 on v5e."""
    try:
        kind = jax.devices()[0].device_kind.lower()
    except Exception:
        kind = ""
    if "v5" in kind and jnp.dtype(dtype).itemsize >= 4:
        return 64
    return 128


def _pick_row_pack(m, w, cap):
    """Largest power-of-two P with P*W <= cap and P | (N*C*H). Density (4*P*W % 128)
    is monotone under doubling, so the largest such P is also the lane-densest."""
    # TODO(synk): for awkward W where 4*P*W never reaches a multiple of 128, pad the
    # lane dim and slice in the wrapper to avoid masked partial stores.
    p = 1
    while 2 * p * w <= cap and m % (2 * p) == 0:
        p *= 2
    return p


def _pick_block_rows(r, pw, itemsize, target=4096, budget=24 * 1024 * 1024):
    """Row-block size: large to amortize per-step overhead, capped by a VMEM budget
    (double-buffered in+out blocks), multiple of 8, and >=2 grid steps when possible."""
    per_row = 2 * (pw + 4 * pw) * itemsize          # double-buffered in + out per row
    cap = max(8, (budget // per_row) // 8 * 8)
    tr = min(target, cap)
    if r <= tr:
        if r <= 8:
            return r                                 # block == full extent (always legal)
        half = ((r + 1) // 2 + 7) // 8 * 8           # ~r/2, rounded up to multiple of 8
        return min(tr, half)                         # >=2 grid steps for v7x megacore
    return tr


@jax.jit
def upsample_nearest_2x(x):
    n, c, h, w = x.shape
    m = n * c * h
    itemsize = jnp.dtype(x.dtype).itemsize

    p = _pick_row_pack(m, w, _pw_cap(x.dtype))       # image rows packed per vector row
    r = m // p
    pw = p * w
    out_w = 4 * pw

    # G dtype matches x for float inputs (bf16 MXU path); ints go through f32.
    # TODO(synk): int inputs with |v| > 2^24 won't round-trip exactly through the
    # f32 matmul (torch nearest on ints is exact); v7x MXU has no integer path.
    mat_dtype = x.dtype if jnp.issubdtype(x.dtype, jnp.floating) else jnp.float32
    g = _expansion_matrix(p, w, mat_dtype)           # (pw, out_w), host constant

    x2 = x.reshape(r, pw)                            # free reshape (contiguous row-major)

    tr = _pick_block_rows(r, pw, itemsize)
    grid = (pl.cdiv(r, tr),)

    out2 = pl.pallas_call(
        upsample_nearest2x_kernel,
        out_shape=jax.ShapeDtypeStruct((r, out_w), x.dtype),
        grid=grid,
        in_specs=[
            pl.BlockSpec((tr, pw), lambda i: (i, 0)),
            pl.BlockSpec((pw, out_w), lambda i: (0, 0)),   # constant index: resident G
        ],
        out_specs=pl.BlockSpec((tr, out_w), lambda i: (i, 0)),
        compiler_params=pltpu.CompilerParams(
            dimension_semantics=("parallel",),
            vmem_limit_bytes=32 * 1024 * 1024,       # blocks budgeted to ~24 MiB + G
        ),
        cost_estimate=pl.CostEstimate(
            flops=2 * r * pw * out_w,
            transcendentals=0,
            bytes_accessed=(r * pw + r * out_w) * itemsize
                           + pw * out_w * jnp.dtype(mat_dtype).itemsize,
        ),
    )(x2, g)

    return out2.reshape(n, c, 2 * h, 2 * w)          # free reshape back to NCHW


if __name__ == "__main__":
    # Shapes consistent with the module: any NCHW tensor; use (2, 4, 16, 16).
    N, C, H, W = 2, 4, 16, 16
    key = jax.random.PRNGKey(0)
    x = jax.random.normal(key, (N, C, H, W), dtype=jnp.float32)

    out = upsample_nearest_2x(x)
    jax.block_until_ready(out)
    assert out.shape == (N, C, 2 * H, 2 * W), out.shape

    # Pure-JAX nearest-2x reference check.
    ref = jnp.repeat(jnp.repeat(x, 2, axis=2), 2, axis=3)
    assert bool(jnp.allclose(out, ref, rtol=1e-6, atol=1e-6)), float(
        jnp.max(jnp.abs(out - ref))
    )

    print("KERNEL_OK")
</pallas_src>

<mosaic_0001>
module attributes {stable_mosaic.version = 11 : i64} {
  func.func @upsample_nearest2x_kernel(%arg0: i32, %arg1: memref<8x128xf32, #tpu.memory_space<vmem>>, %arg2: memref<128x512xf32, #tpu.memory_space<vmem>>, %arg3: memref<8x512xf32, #tpu.memory_space<vmem>>) attributes {dimension_semantics = [#tpu.dimension_semantics<parallel>], iteration_bounds = array<i64: 2>, scalar_prefetch = 0 : i64, scratch_operands = 0 : i64, tpu.core_type = #tpu.core_type<tc>, window_params = [{transform_indices = @transform_0, window_bounds = array<i64: 8, 128>}, {pipeline_mode = #tpu.pipeline_mode<synchronous>, transform_indices = @transform_1, window_bounds = array<i64: 128, 512>}, {transform_indices = @transform_2, window_bounds = array<i64: 8, 512>}]} {
    %c0 = arith.constant 0 : index
    %c0_0 = arith.constant 0 : index
    %0 = vector.load %arg1[%c0, %c0_0] : memref<8x128xf32, #tpu.memory_space<vmem>>, vector<8x128xf32>
    %c0_1 = arith.constant 0 : index
    %c0_2 = arith.constant 0 : index
    %1 = vector.load %arg2[%c0_1, %c0_2] : memref<128x512xf32, #tpu.memory_space<vmem>>, vector<128x512xf32>
    %cst = arith.constant dense<0.000000e+00> : vector<8x512xf32>
    %2 = tpu.matmul %0, %1, %cst {dimension_numbers = #tpu.dot_dimension_numbers<[1], [0], [0], [1], [0, 0, 1, 1], [], []>} : vector<8x128xf32>, vector<128x512xf32>, vector<8x512xf32> -> vector<8x512xf32>
    %c0_3 = arith.constant 0 : index
    %c0_4 = arith.constant 0 : index
    %3 = vector.load %arg3[%c0_3, %c0_4] : memref<8x512xf32, #tpu.memory_space<vmem>>, vector<8x512xf32>
    tpu.vector_store %arg3[%c0_3, %c0_4], %2 {strides = array<i32>} : memref<8x512xf32, #tpu.memory_space<vmem>>, vector<8x512xf32>,
    return
  }
  func.func @transform_0(%arg0: i32) -> (i32, i32) {
    %c0_i32 = arith.constant 0 : i32
    %c0_i32_0 = arith.constant 0 : i32
    return %arg0, %c0_i32 : i32, i32
  }
  func.func @transform_1(%arg0: i32) -> (i32, i32) {
    %c0_i32 = arith.constant 0 : i32
    %c0_i32_0 = arith.constant 0 : i32
    %c0_i32_1 = arith.constant 0 : i32
    return %c0_i32, %c0_i32_0 : i32, i32
  }
  func.func @transform_2(%arg0: i32) -> (i32, i32) {
    %c0_i32 = arith.constant 0 : i32
    %c0_i32_0 = arith.constant 0 : i32
    return %arg0, %c0_i32 : i32, i32
  }
}

</mosaic_0001>

<bundles_post_ra>
// kernel: upsample_nearest_2x.1
= control target key start
LH: loop header
LB: loop body
LE: loop exit
PB: predicated region body
PF: predicated region fallthrough
CT: control target
= control target key end

     0   :  { %7 = vsyncpa [#allocation3], 0  ;;  %s468_s9 = smov 0   ;;  %s499_s0 = inlined_call_operand.vmem [shape: f32[16,128], index: 0, kind: input, shape index: {}]   ;;  %s500_s1 = inlined_call_operand.hbm [shape: f32[128,512], index: 1, kind: input, shape index: {}]   ;;  %s501_s2 = inlined_call_operand.vmem [shape: f32[16,512], index: 2, kind: output, shape index: {}]  }
   0x1 LB: > { %s102_s12 = sshll.u32 %s500_s1, 4  ;;  %s477_s13 = sadd.s32 4294967295, %s448_s9   ;;  %s448_s9 = sphi %s468_s9, %s13_s9   ;;  %s103_s12 = int_to_ptr.hbm [resolvable:$true] %s102_s12 }
   0x2   : > { %p376_p0 = scmp.ge.s32.totalorder %s448_s9, 1  ;;  %p91_p1 = scmp.lt.s32.totalorder %s448_s9, 3 }
   0x3   : > { %p395_p2 = scmp.eq.s32.totalorder %s477_s13, 0  ;;  %s450_s14 = smov [#allocation2]  }
   0x4   : > { %p92_p3 = pnand %p376_p0, %p91_p1  ;;  %s104_s15 = sshll.u32 %s450_s14, 4  ;;  %s105_s15 = int_to_ptr.vmem [resolvable:$true] %s104_s15 }
   0x5   : > { %s451_s16 = smov 512   ;;  %s452_s17 = smov 32  }
   0x6   : > { %p391_p4 = pneg %p92_p3  ;;  %127 = sbr.rel (%p92_p3) target bundleno = 178 (0xb2), region = 28 }
   0x8   : > { %p392_p5 = pnand %p395_p2, %p391_p4 }
   0xa   : > { %394 = dma.hbm_to_vmem [thread:$0]  (!%p392_p5), %s103_s12, 8192, %s105_s15, [#allocation3], %s451_s16, %s451_s16, %s452_s17  }
   0xb   : > { %443 = dma.done.wait (%p395_p2), [#allocation3], 8192  }
   0xc   : > { %445 = vsyncadd (%p395_p2), [#allocation3], 4294959104  ;;  %v221_v0 = vld [vmem:[#allocation2 + $0x1f0] sm:$0xff]  ;;  %v222_v1 = vld [vmem:[#allocation2 + $0x1f8] sm:$0xff]  ;;  %p149_p6 = scmp.lt.s32.totalorder %s477_s13, 1 }
   0xd   : > { %v217_v2 = vld [vmem:[#allocation2 + $0x1d0] sm:$0xff]  ;;  %263 = vmatpush.msra.mxu2 %v221_v0  ;;  %283 = vmatpush.msra.mxu3 %v222_v1  ;;  %v218_v3 = vld [vmem:[#allocation2 + $0x1d8] sm:$0xff]  ;;  %v219_v6 = vld [vmem:[#allocation2 + $0x1e0] sm:$0xff] }
   0xe   : > { %v213_v4 = vld [vmem:[#allocation2 + $0x1b0] sm:$0xff]  ;;  %v214_v5 = vld [vmem:[#allocation2 + $0x1b8] sm:$0xff]  ;;  %v220_v7 = vld [vmem:[#allocation2 + $0x1e8] sm:$0xff]  ;;  %223 = vmatpush.msra.mxu0 %v219_v6  ;;  %s503_s13 = smov (!%p149_p6, %s477_s13), 1 }
   0xf   : > { %264 = vmatpush.msra.mxu2 %v217_v2  ;;  %284 = vmatpush.msra.mxu3 %v218_v3  ;;  %v215_v8 = vld [vmem:[#allocation2 + $0x1c0] sm:$0xff]  ;;  %v216_v9 = vld [vmem:[#allocation2 + $0x1c8] sm:$0xff]  ;;  %v209_v10 = vld [vmem:[#allocation2 + $0x190] sm:$0xff]  ;;  %s381_s18 = sshll.u32 %s503_s13, 3  ;;  %s386_s22 = sshll.u32 %s503_s13, 5 }
  0x10   : > { %243 = vmatpush.msra.mxu1 %v220_v7  ;;  %v210_v11 = vld [vmem:[#allocation2 + $0x198] sm:$0xff]  ;;  %v211_v12 = vld [vmem:[#allocation2 + $0x1a0] sm:$0xff]  ;;  %v212_v13 = vld [vmem:[#allocation2 + $0x1a8] sm:$0xff]  ;;  %224 = vmatpush.msra.mxu0 %v215_v8  ;;  %s152_s21 = scalar_lea.vmem %s499_s0, %s381_s18  ;;  %s157_s25 = scalar_lea.vmem %s501_s2, %s386_s22 }
  0x11   : > { %265 = vmatpush.msra.mxu2 %v213_v4  ;;  %285 = vmatpush.msra.mxu3 %v214_v5  ;;  %v205_v14 = vld [vmem:[#allocation2 + $0x170] sm:$0xff]  ;;  %v206_v15 = vld [vmem:[#allocation2 + $0x178] sm:$0xff]  ;;  %v207_v16 = vld [vmem:[#allocation2 + $0x180] sm:$0xff] }
  0x12   : > { %244 = vmatpush.msra.mxu1 %v216_v9  ;;  %v208_v17 = vld [vmem:[#allocation2 + $0x188] sm:$0xff]  ;;  %225 = vmatpush.msra.mxu0 %v211_v12  ;;  %v201_v18 = vld [vmem:[#allocation2 + $0x150] sm:$0xff]  ;;  %v202_v19 = vld [vmem:[#allocation2 + $0x158] sm:$0xff] }
  0x13   : > { %266 = vmatpush.msra.mxu2 %v209_v10  ;;  %286 = vmatpush.msra.mxu3 %v210_v11  ;;  %v203_v20 = vld [vmem:[#allocation2 + $0x160] sm:$0xff]  ;;  %v204_v21 = vld [vmem:[#allocation2 + $0x168] sm:$0xff]  ;;  %v197_v22 = vld [vmem:[#allocation2 + $0x130] sm:$0xff] }
  0x14   : > { %245 = vmatpush.msra.mxu1 %v212_v13  ;;  %226 = vmatpush.msra.mxu0 %v207_v16  ;;  %v198_v23 = vld [vmem:[#allocation2 + $0x138] sm:$0xff]  ;;  %v199_v24 = vld [vmem:[#allocation2 + $0x140] sm:$0xff]  ;;  %v200_v25 = vld [vmem:[#allocation2 + $0x148] sm:$0xff] }
  0x15   : > { %267 = vmatpush.msra.mxu2 %v205_v14  ;;  %287 = vmatpush.msra.mxu3 %v206_v15  ;;  %v193_v26 = vld [vmem:[#allocation2 + $0x110] sm:$0xff]  ;;  %v194_v27 = vld [vmem:[#allocation2 + $0x118] sm:$0xff]  ;;  %v195_v28 = vld [vmem:[#allocation2 + $0x120] sm:$0xff] }
  0x16   : > { %246 = vmatpush.msra.mxu1 %v208_v17  ;;  %227 = vmatpush.msra.mxu0 %v203_v20  ;;  %v196_v29 = vld [vmem:[#allocation2 + $0x128] sm:$0xff]  ;;  %v189_v30 = vld [vmem:[#allocation2 + $0xf0] sm:$0xff]  ;;  %v190_v31 = vld [vmem:[#allocation2 + $0xf8] sm:$0xff] }
  0x17   : > { %268 = vmatpush.msra.mxu2 %v201_v18  ;;  %288 = vmatpush.msra.mxu3 %v202_v19  ;;  %v191_v32 = vld [vmem:[#allocation2 + $0x100] sm:$0xff]  ;;  %v192_v33 = vld [vmem:[#allocation2 + $0x108] sm:$0xff]  ;;  %v185_v34 = vld [vmem:[#allocation2 + $0xd0] sm:$0xff] }
  0x18   : > { %247 = vmatpush.msra.mxu1 %v204_v21  ;;  %228 = vmatpush.msra.mxu0 %v199_v24  ;;  %v186_v35 = vld [vmem:[#allocation2 + $0xd8] sm:$0xff]  ;;  %v187_v36 = vld [vmem:[#allocation2 + $0xe0] sm:$0xff]  ;;  %v188_v37 = vld [vmem:[#allocation2 + $0xe8] sm:$0xff] }
  0x19   : > { %269 = vmatpush.msra.mxu2 %v197_v22  ;;  %289 = vmatpush.msra.mxu3 %v198_v23  ;;  %v181_v38 = vld [vmem:[#allocation2 + $0xb0] sm:$0xff]  ;;  %v182_v39 = vld [vmem:[#allocation2 + $0xb8] sm:$0xff]  ;;  %v183_v40 = vld [vmem:[#allocation2 + $0xc0] sm:$0xff] }
  0x1a   : > { %248 = vmatpush.msra.mxu1 %v200_v25  ;;  %229 = vmatpush.msra.mxu0 %v195_v28  ;;  %v184_v41 = vld [vmem:[#allocation2 + $0xc8] sm:$0xff]  ;;  %v177_v42 = vld [vmem:[#allocation2 + $0x90] sm:$0xff]  ;;  %v178_v43 = vld [vmem:[#allocation2 + $0x98] sm:$0xff] }
  0x1b   : > { %270 = vmatpush.msra.mxu2 %v193_v26  ;;  %290 = vmatpush.msra.mxu3 %v194_v27  ;;  %v179_v44 = vld [vmem:[#allocation2 + $0xa0] sm:$0xff]  ;;  %v180_v45 = vld [vmem:[#allocation2 + $0xa8] sm:$0xff]  ;;  %v173_v46 = vld [vmem:[#allocation2 + $0x70] sm:$0xff] }
  0x1c   : > { %249 = vmatpush.msra.mxu1 %v196_v29  ;;  %230 = vmatpush.msra.mxu0 %v191_v32  ;;  %v174_v47 = vld [vmem:[#allocation2 + $0x78] sm:$0xff]  ;;  %v175_v48 = vld [vmem:[#allocation2 + $0x80] sm:$0xff]  ;;  %v176_v49 = vld [vmem:[#allocation2 + $0x88] sm:$0xff] }
  0x1d   : > { %271 = vmatpush.msra.mxu2 %v189_v30  ;;  %291 = vmatpush.msra.mxu3 %v190_v31  ;;  %v169_v50 = vld [vmem:[#allocation2 + $0x50] sm:$0xff]  ;;  %v170_v51 = vld [vmem:[#allocation2 + $0x58] sm:$0xff]  ;;  %v171_v52 = vld [vmem:[#allocation2 + $0x60] sm:$0xff] }
  0x1e   : > { %250 = vmatpush.msra.mxu1 %v192_v33  ;;  %231 = vmatpush.msra.mxu0 %v187_v36  ;;  %v172_v53 = vld [vmem:[#allocation2 + $0x68] sm:$0xff]  ;;  %v165_v54 = vld [vmem:[#allocation2 + $0x30] sm:$0xff]  ;;  %v166_v55 = vld [vmem:[#allocation2 + $0x38] sm:$0xff] }
  0x1f   : > { %272 = vmatpush.msra.mxu2 %v185_v34  ;;  %292 = vmatpush.msra.mxu3 %v186_v35  ;;  %v167_v56 = vld [vmem:[#allocation2 + $0x40] sm:$0xff]  ;;  %v168_v57 = vld [vmem:[#allocation2 + $0x48] sm:$0xff]  ;;  %v161_v58 = vld [vmem:[#allocation2 + $0x10] sm:$0xff] }
  0x20   : > { %251 = vmatpush.msra.mxu1 %v188_v37  ;;  %232 = vmatpush.msra.mxu0 %v183_v40  ;;  %v162_v59 = vld [vmem:[#allocation2 + $0x18] sm:$0xff]  ;;  %v158_v60 = vld [vmem:[%s152_s21] sm:$0xff]  ;;  %v164_v62 = vld [vmem:[#allocation2 + $0x28] sm:$0xff] }
  0x21   : > { %273 = vmatpush.msra.mxu2 %v181_v38  ;;  %293 = vmatpush.msra.mxu3 %v182_v39  ;;  %v163_v61 = vld [vmem:[#allocation2 + $0x20] sm:$0xff]  ;;  %v160_v0 = vld [vmem:[#allocation2 + $0x8] sm:$0xff] }
  0x22   : > { %252 = vmatpush.msra.mxu1 %v184_v41  ;;  %233 = vmatpush.msra.mxu0 %v179_v44  ;;  %v159_v63 = vld [vmem:[#allocation2] sm:$0xff] }
  0x23   : > { %274 = vmatpush.msra.mxu2 %v177_v42  ;;  %294 = vmatpush.msra.mxu3 %v178_v43 }
  0x24   : > { %253 = vmatpush.msra.mxu1 %v180_v45  ;;  %234 = vmatpush.msra.mxu0 %v175_v48 }
  0x25   : > { %275 = vmatpush.msra.mxu2 %v173_v46  ;;  %295 = vmatpush.msra.mxu3 %v174_v47 }
  0x26   : > { %254 = vmatpush.msra.mxu1 %v176_v49  ;;  %235 = vmatpush.msra.mxu0 %v171_v52 }
  0x27   : > { %276 = vmatpush.msra.mxu2 %v169_v50  ;;  %296 = vmatpush.msra.mxu3 %v170_v51 }
  0x28   : > { %255 = vmatpush.msra.mxu1 %v172_v53  ;;  %236 = vmatpush.msra.mxu0 %v167_v56 }
  0x29   : > { %277 = vmatpush.msra.mxu2 %v165_v54  ;;  %297 = vmatpush.msra.mxu3 %v166_v55 }
  0x2a   : > { %256 = vmatpush.msra.mxu1 %v168_v57  ;;  %237 = vmatpush.msra.mxu0 %v163_v61 }
  0x2b   : > { %278 = vmatpush.msra.mxu2 %v161_v58  ;;  %298 = vmatpush.msra.mxu3 %v162_v59 }
  0x2c   : > { %279 = vmatmul.f32.vlgmr.msra.gmra.mxu2 %v158_v60  ;;  %299 = vmatmul.f32.vlgmr.msra.gmra.mxu3 %v158_v60 }
  0x2d   : > { %257 = vmatpush.msra.mxu1 %v164_v62  ;;  %238 = vmatpush.msra.mxu0 %v159_v63 }
  0x2e   : > { %239 = vmatmul.f32.vlgmr.msra.gmra.mxu0 %v158_v60 }
  0x2f   : > { %258 = vmatpush.msra.mxu1 %v160_v0 }
  0x30   : > { %259 = vmatmul.f32.vlgmr.msra.gmra.mxu1 %v158_v60 }
  0xab   : > { %v240_v1 = vpop.f32.mrf.mxu0 }
  0xac   : > { %303 = vst [vmem:[%s157_s25] sm:$0xff] %v240_v1 }
  0xad   : > { %v260_v2 = vpop.f32.mrf.mxu1 }
  0xae   : > { %304 = vst [vmem:[%s157_s25 + $0x8] sm:$0xff] %v260_v2 }
  0xaf   : > { %v280_v3 = vpop.f32.mrf.mxu2  ;;  %v300_v4 = vpop.f32.mrf.mxu3 }
  0xb0   : > { %305 = vst [vmem:[%s157_s25 + $0x10] sm:$0xff] %v280_v3 }
  0xb1   : > { %306 = vst [vmem:[%s157_s25 + $0x18] sm:$0xff] %v300_v4 }
  0xb2 PF: > { %s13_s9 = sadd.s32 1, %s448_s9  }
  0xb3   : > { %p10_p7 = scmp.ge.s32.totalorder %s13_s9, 4  }
  0xb5   :  { %12 = sbr.rel (!%p10_p7) target bundleno = 1 (0x1), region = 63 }
  0xba   :  { %328 = vsyncpa [#allocation3], 1 }
  0xbb   :  { %330 = vsyncpa [#allocation3 + $0x1], 1 }

</bundles_post_ra>
